<compile_context>
chip_gen: v7x
topology: tpu7x:2x2x1
jax: 0.10.0
libtpu: 0.0.40
codegen_flags: <defaults>
</compile_context>

<pallas_src>
import math
import functools

import jax
import jax.numpy as jnp
from jax.experimental import pallas as pl
from jax.experimental.pallas import tpu as pltpu


def _attention_kernel(x_ref, mrow_ref, mcol_ref, gamma_ref, beta_ref,
                      wqkv_ref, wout_ref, bout_ref, o_ref,
                      *, heads, dim_head, ln_eps):
    inner = heads * dim_head

    # ---- LayerNorm in f32, once per batch step ----
    x = x_ref[0].astype(jnp.float32)                               # (N, D)
    mu = jnp.mean(x, axis=-1, keepdims=True)
    var = jnp.mean((x - mu) ** 2, axis=-1, keepdims=True)
    xn = (x - mu) * jax.lax.rsqrt(var + ln_eps)
    xn = (xn * gamma_ref[...] + beta_ref[...]).astype(jnp.bfloat16)  # (N, D) bf16

    # ---- one fused QKV projection for all heads (full-width MXU matmul) ----
    qkv = jnp.dot(xn, wqkv_ref[...], preferred_element_type=jnp.float32)   # (N, 3*inner)
    q_all = qkv[:, :inner].astype(jnp.bfloat16)        # 1/sqrt(Dh) pre-folded into weights
    k_all = qkv[:, inner:2 * inner].astype(jnp.bfloat16)
    v_all = qkv[:, 2 * inner:].astype(jnp.bfloat16)

    # ---- pairwise mask computed once, reused by every head ----
    pair = (mcol_ref[0] * mrow_ref[0]) > 0.5           # (N,1)*(1,N) -> (N,N) bool
    neg = jnp.float32(-1e30)                           # finite fill (masked_fill semantics)

    # ---- per-head (N,N) softmax attention (heads unrolled, projections already fused) ----
    head_outs = []
    for h in range(heads):
        sl = slice(h * dim_head, (h + 1) * dim_head)
        q = q_all[:, sl]                               # (N, Dh) bf16
        k = k_all[:, sl]
        v = v_all[:, sl]
        # Q @ K^T by contracting Dh on both operands -> no materialized transpose of k
        dots = jax.lax.dot_general(q, k, (((1,), (1,)), ((), ())),
                                   preferred_element_type=jnp.float32)    # (N, N) f32
        dots = jnp.where(pair, dots, neg)
        dots = dots - jnp.max(dots, axis=-1, keepdims=True)
        e = jnp.exp(dots)
        inv = pl.reciprocal(jnp.sum(e, axis=-1, keepdims=True), approx=True)
        attn = (e * inv).astype(jnp.bfloat16)          # dropout p=0.0 -> identity
        head_outs.append(
            jnp.dot(attn, v, preferred_element_type=jnp.float32).astype(jnp.bfloat16))

    # ---- single fused output projection over all heads, single o_ref store ----
    merged = jnp.concatenate(head_outs, axis=-1)       # (N, inner) bf16
    out = jnp.dot(merged, wout_ref[...], preferred_element_type=jnp.float32)  # (N, D) f32
    o_ref[0] = out + bout_ref[...]                     # one write, no per-head RMW


def attention_forward(x, mask_bool, params, *, heads, dim_head):
    """Equivalent of Attention.forward(x, mask=mask) with output_num_tokens=None.

    Returns (out, mask, sampled_token_ids=None).
    """
    B, N, D = x.shape
    inner = heads * dim_head
    scale = 1.0 / math.sqrt(dim_head)

    # w_qkv columns are [q | k | v], each head-major (col = h*Dh + d) -> already the layout
    # the kernel slices.  Fold the attention scale into the q columns (free at runtime).
    w_qkv = params["w_qkv"]                                              # (D, 3*inner) f32
    w_qkv_packed = jnp.concatenate(
        [w_qkv[:, :inner] * scale, w_qkv[:, inner:]], axis=-1).astype(jnp.bfloat16)
    w_out = params["w_out"].astype(jnp.bfloat16)                         # (inner, D)

    mask_row = mask_bool.astype(jnp.float32).reshape(B, 1, N)
    mask_col = mask_bool.astype(jnp.float32).reshape(B, N, 1)

    kernel = functools.partial(_attention_kernel,
                               heads=heads, dim_head=dim_head, ln_eps=1e-5)

    out = pl.pallas_call(
        kernel,
        out_shape=jax.ShapeDtypeStruct((B, N, D), jnp.float32),
        grid=(B,),
        in_specs=[
            pl.BlockSpec((1, N, D), lambda b: (b, 0, 0)),        # x
            pl.BlockSpec((1, 1, N), lambda b: (b, 0, 0)),        # mask rows
            pl.BlockSpec((1, N, 1), lambda b: (b, 0, 0)),        # mask cols
            pl.BlockSpec((1, D), lambda b: (0, 0)),              # gamma
            pl.BlockSpec((1, D), lambda b: (0, 0)),              # beta
            pl.BlockSpec((D, 3 * inner), lambda b: (0, 0)),      # fused qkv weights (all heads)
            pl.BlockSpec((inner, D), lambda b: (0, 0)),          # fused out-proj weights
            pl.BlockSpec((1, D), lambda b: (0, 0)),              # out-proj bias
        ],
        out_specs=pl.BlockSpec((1, N, D), lambda b: (b, 0, 0)),
        compiler_params=pltpu.CompilerParams(
            dimension_semantics=("parallel",)),
    )(x, mask_row, mask_col, params["gamma"], params["beta"],
      w_qkv_packed, w_out, params["b_out"])

    return out, mask_bool, None


def attention_ref(x, mask_bool, params, *, heads, dim_head):
    """Pure-JAX f32 reference mirroring the PyTorch forward."""
    B, N, D = x.shape
    gamma, beta = params["gamma"][0], params["beta"][0]
    mu = x.mean(-1, keepdims=True)
    var = ((x - mu) ** 2).mean(-1, keepdims=True)
    xn = (x - mu) / jnp.sqrt(var + 1e-5) * gamma + beta

    qkv = xn @ params["w_qkv"]                                    # (B, N, 3*inner)
    q, k, v = jnp.split(qkv, 3, axis=-1)
    sh = lambda t: t.reshape(B, N, heads, dim_head).transpose(0, 2, 1, 3)
    q, k, v = sh(q), sh(k), sh(v)                                 # (B, H, N, Dh)

    dots = jnp.einsum("bhid,bhjd->bhij", q, k) * (dim_head ** -0.5)
    pair = mask_bool[:, None, :, None] & mask_bool[:, None, None, :]
    dots = jnp.where(pair, dots, -jnp.finfo(jnp.float32).max)
    attn = jax.nn.softmax(dots, axis=-1)
    out = jnp.einsum("bhij,bhjd->bhid", attn, v)
    out = out.transpose(0, 2, 1, 3).reshape(B, N, heads * dim_head)
    return out @ params["w_out"] + params["b_out"][0]


def init_params(key, dim, heads, dim_head):
    inner = heads * dim_head
    k1, k2, k3 = jax.random.split(key, 3)
    return {
        "gamma": jnp.ones((1, dim), jnp.float32),
        "beta": jnp.zeros((1, dim), jnp.float32),
        "w_qkv": jax.random.normal(k1, (dim, 3 * inner), jnp.float32) * 0.05,
        "w_out": jax.random.normal(k2, (inner, dim), jnp.float32) * 0.05,
        "b_out": jax.random.normal(k3, (1, dim), jnp.float32) * 0.01,
    }


if __name__ == "__main__":
    B, N, D = 2, 8, 32
    heads, dim_head = 2, 16

    key = jax.random.PRNGKey(0)
    kx, kp = jax.random.split(key)
    x = jax.random.normal(kx, (B, N, D), jnp.float32)
    # mask: most tokens valid; last two of batch 1 padded out
    mask = jnp.ones((B, N), jnp.bool_)
    mask = mask.at[1, -2:].set(False)

    params = init_params(kp, D, heads, dim_head)

    out, out_mask, sampled_ids = attention_forward(
        x, mask, params, heads=heads, dim_head=dim_head)
    out = jax.block_until_ready(out)

    ref = attention_ref(x, mask, params, heads=heads, dim_head=dim_head)
    # bf16 MXU operands + approx reciprocal => compare at bf16-appropriate tolerance
    assert jnp.allclose(out, ref, atol=2e-2, rtol=2e-2), "mismatch vs reference"
    assert out.shape == (B, N, D)
    assert sampled_ids is None

    print("KERNEL_OK")
</pallas_src>

<mosaic_0001>
module attributes {stable_mosaic.version = 11 : i64} {
  func.func @_attention_kernel(%arg0: i32, %arg1: memref<1x8x32xf32, #tpu.memory_space<vmem>>, %arg2: memref<1x1x8xf32, #tpu.memory_space<vmem>>, %arg3: memref<1x8x1xf32, #tpu.memory_space<vmem>>, %arg4: memref<1x32xf32, #tpu.memory_space<vmem>>, %arg5: memref<1x32xf32, #tpu.memory_space<vmem>>, %arg6: memref<32x96xbf16, #tpu.memory_space<vmem>>, %arg7: memref<32x32xbf16, #tpu.memory_space<vmem>>, %arg8: memref<1x32xf32, #tpu.memory_space<vmem>>, %arg9: memref<1x8x32xf32, #tpu.memory_space<vmem>>) attributes {dimension_semantics = [#tpu.dimension_semantics<parallel>], iteration_bounds = array<i64: 2>, scalar_prefetch = 0 : i64, scratch_operands = 0 : i64, tpu.core_type = #tpu.core_type<tc>, window_params = [{transform_indices = @transform_0, window_bounds = array<i64: 1, 8, 32>}, {transform_indices = @transform_1, window_bounds = array<i64: 1, 1, 8>}, {transform_indices = @transform_2, window_bounds = array<i64: 1, 8, 1>}, {pipeline_mode = #tpu.pipeline_mode<synchronous>, transform_indices = @transform_3, window_bounds = array<i64: 1, 32>}, {pipeline_mode = #tpu.pipeline_mode<synchronous>, transform_indices = @transform_4, window_bounds = array<i64: 1, 32>}, {pipeline_mode = #tpu.pipeline_mode<synchronous>, transform_indices = @transform_5, window_bounds = array<i64: 32, 96>}, {pipeline_mode = #tpu.pipeline_mode<synchronous>, transform_indices = @transform_6, window_bounds = array<i64: 32, 32>}, {pipeline_mode = #tpu.pipeline_mode<synchronous>, transform_indices = @transform_7, window_bounds = array<i64: 1, 32>}, {transform_indices = @transform_8, window_bounds = array<i64: 1, 8, 32>}]} {
    %c0 = arith.constant 0 : index
    %c0_0 = arith.constant 0 : index
    %c0_1 = arith.constant 0 : index
    %0 = vector.load %arg1[%c0, %c0_0, %c0_1] : memref<1x8x32xf32, #tpu.memory_space<vmem>>, vector<1x8x32xf32>
    %1 = vector.shape_cast %0 : vector<1x8x32xf32> to vector<8x32xf32>
    %cst = arith.constant dense<0.000000e+00> : vector<8xf32>
    %2 = vector.multi_reduction <add>, %1, %cst [1] : vector<8x32xf32> to vector<8xf32>
    %3 = vector.shape_cast %2 : vector<8xf32> to vector<8x1xf32>
    %cst_2 = arith.constant 3.200000e+01 : f32
    %4 = vector.broadcast %cst_2 : f32 to vector<8x1xf32>
    %5 = arith.divf %3, %4 : vector<8x1xf32>
    %6 = vector.broadcast %5 : vector<8x1xf32> to vector<8x32xf32>
    %7 = arith.subf %1, %6 : vector<8x32xf32>
    %8 = arith.mulf %7, %7 : vector<8x32xf32>
    %cst_3 = arith.constant dense<0.000000e+00> : vector<8xf32>
    %9 = vector.multi_reduction <add>, %8, %cst_3 [1] : vector<8x32xf32> to vector<8xf32>
    %10 = vector.shape_cast %9 : vector<8xf32> to vector<8x1xf32>
    %cst_4 = arith.constant 3.200000e+01 : f32
    %11 = vector.broadcast %cst_4 : f32 to vector<8x1xf32>
    %12 = arith.divf %10, %11 : vector<8x1xf32>
    %13 = vector.broadcast %5 : vector<8x1xf32> to vector<8x32xf32>
    %14 = arith.subf %1, %13 : vector<8x32xf32>
    %cst_5 = arith.constant 9.99999974E-6 : f32
    %15 = vector.broadcast %cst_5 : f32 to vector<8x1xf32>
    %16 = arith.addf %12, %15 : vector<8x1xf32>
    %17 = math.rsqrt %16 : vector<8x1xf32>
    %18 = vector.broadcast %17 : vector<8x1xf32> to vector<8x32xf32>
    %19 = arith.mulf %14, %18 : vector<8x32xf32>
    %c0_6 = arith.constant 0 : index
    %c0_7 = arith.constant 0 : index
    %20 = vector.load %arg4[%c0_6, %c0_7] : memref<1x32xf32, #tpu.memory_space<vmem>>, vector<1x32xf32>
    %21 = vector.broadcast %20 : vector<1x32xf32> to vector<8x32xf32>
    %22 = arith.mulf %19, %21 : vector<8x32xf32>
    %c0_8 = arith.constant 0 : index
    %c0_9 = arith.constant 0 : index
    %23 = vector.load %arg5[%c0_8, %c0_9] : memref<1x32xf32, #tpu.memory_space<vmem>>, vector<1x32xf32>
    %24 = vector.broadcast %23 : vector<1x32xf32> to vector<8x32xf32>
    %25 = arith.addf %22, %24 : vector<8x32xf32>
    %26 = arith.truncf %25 : vector<8x32xf32> to vector<8x32xbf16>
    %c0_10 = arith.constant 0 : index
    %c0_11 = arith.constant 0 : index
    %27 = vector.load %arg6[%c0_10, %c0_11] : memref<32x96xbf16, #tpu.memory_space<vmem>>, vector<32x96xbf16>
    %cst_12 = arith.constant dense<0.000000e+00> : vector<8x96xf32>
    %28 = tpu.matmul %26, %27, %cst_12 {dimension_numbers = #tpu.dot_dimension_numbers<[1], [0], [0], [1], [0, 0, 1, 1], [], []>} : vector<8x32xbf16>, vector<32x96xbf16>, vector<8x96xf32> -> vector<8x96xf32>
    %29 = vector.extract_strided_slice %28 {offsets = [0, 0], sizes = [8, 32], strides = [1, 1]} : vector<8x96xf32> to vector<8x32xf32>
    %30 = arith.truncf %29 : vector<8x32xf32> to vector<8x32xbf16>
    %31 = vector.extract_strided_slice %28 {offsets = [0, 32], sizes = [8, 32], strides = [1, 1]} : vector<8x96xf32> to vector<8x32xf32>
    %32 = arith.truncf %31 : vector<8x32xf32> to vector<8x32xbf16>
    %33 = vector.extract_strided_slice %28 {offsets = [0, 64], sizes = [8, 32], strides = [1, 1]} : vector<8x96xf32> to vector<8x32xf32>
    %34 = arith.truncf %33 : vector<8x32xf32> to vector<8x32xbf16>
    %c0_13 = arith.constant 0 : index
    %c0_14 = arith.constant 0 : index
    %c0_15 = arith.constant 0 : index
    %35 = vector.load %arg3[%c0_13, %c0_14, %c0_15] : memref<1x8x1xf32, #tpu.memory_space<vmem>>, vector<1x8x1xf32>
    %36 = vector.shape_cast %35 : vector<1x8x1xf32> to vector<8x1xf32>
    %c0_16 = arith.constant 0 : index
    %c0_17 = arith.constant 0 : index
    %c0_18 = arith.constant 0 : index
    %37 = vector.load %arg2[%c0_16, %c0_17, %c0_18] : memref<1x1x8xf32, #tpu.memory_space<vmem>>, vector<1x1x8xf32>
    %38 = vector.shape_cast %37 : vector<1x1x8xf32> to vector<1x8xf32>
    %39 = vector.broadcast %36 : vector<8x1xf32> to vector<8x8xf32>
    %40 = vector.broadcast %38 : vector<1x8xf32> to vector<8x8xf32>
    %41 = arith.mulf %39, %40 : vector<8x8xf32>
    %cst_19 = arith.constant 5.000000e-01 : f32
    %42 = vector.broadcast %cst_19 : f32 to vector<8x8xf32>
    %43 = arith.cmpf ogt, %41, %42 : vector<8x8xf32>
    %44 = vector.extract_strided_slice %30 {offsets = [0, 0], sizes = [8, 16], strides = [1, 1]} : vector<8x32xbf16> to vector<8x16xbf16>
    %45 = vector.extract_strided_slice %32 {offsets = [0, 0], sizes = [8, 16], strides = [1, 1]} : vector<8x32xbf16> to vector<8x16xbf16>
    %46 = vector.extract_strided_slice %34 {offsets = [0, 0], sizes = [8, 16], strides = [1, 1]} : vector<8x32xbf16> to vector<8x16xbf16>
    %cst_20 = arith.constant dense<0.000000e+00> : vector<8x8xf32>
    %47 = tpu.matmul %44, %45, %cst_20 {dimension_numbers = #tpu.dot_dimension_numbers<[1], [1], [0], [0], [0, 0, 1, 0], [], []>} : vector<8x16xbf16>, vector<8x16xbf16>, vector<8x8xf32> -> vector<8x8xf32>
    %cst_21 = arith.constant -1.000000e+30 : f32
    %48 = vector.broadcast %cst_21 : f32 to vector<8x8xf32>
    %49 = arith.select %43, %47, %48 : vector<8x8xi1>, vector<8x8xf32>
    %cst_22 = arith.constant dense<0xFF800000> : vector<8xf32>
    %50 = vector.multi_reduction <maximumf>, %49, %cst_22 [1] : vector<8x8xf32> to vector<8xf32>
    %51 = vector.shape_cast %50 : vector<8xf32> to vector<8x1xf32>
    %52 = vector.broadcast %51 : vector<8x1xf32> to vector<8x8xf32>
    %53 = arith.subf %49, %52 : vector<8x8xf32>
    %54 = math.exp %53 : vector<8x8xf32>
    %cst_23 = arith.constant dense<0.000000e+00> : vector<8xf32>
    %55 = vector.multi_reduction <add>, %54, %cst_23 [1] : vector<8x8xf32> to vector<8xf32>
    %56 = vector.shape_cast %55 : vector<8xf32> to vector<8x1xf32>
    %57 = tpu.reciprocal %56 {approx = true} : vector<8x1xf32> -> vector<8x1xf32>
    %58 = vector.broadcast %57 : vector<8x1xf32> to vector<8x8xf32>
    %59 = arith.mulf %54, %58 : vector<8x8xf32>
    %60 = arith.truncf %59 : vector<8x8xf32> to vector<8x8xbf16>
    %cst_24 = arith.constant dense<0.000000e+00> : vector<8x16xf32>
    %61 = tpu.matmul %60, %46, %cst_24 {dimension_numbers = #tpu.dot_dimension_numbers<[1], [0], [0], [1], [0, 0, 1, 1], [], []>} : vector<8x8xbf16>, vector<8x16xbf16>, vector<8x16xf32> -> vector<8x16xf32>
    %62 = arith.truncf %61 : vector<8x16xf32> to vector<8x16xbf16>
    %63 = vector.extract_strided_slice %30 {offsets = [0, 16], sizes = [8, 16], strides = [1, 1]} : vector<8x32xbf16> to vector<8x16xbf16>
    %64 = vector.extract_strided_slice %32 {offsets = [0, 16], sizes = [8, 16], strides = [1, 1]} : vector<8x32xbf16> to vector<8x16xbf16>
    %65 = vector.extract_strided_slice %34 {offsets = [0, 16], sizes = [8, 16], strides = [1, 1]} : vector<8x32xbf16> to vector<8x16xbf16>
    %cst_25 = arith.constant dense<0.000000e+00> : vector<8x8xf32>
    %66 = tpu.matmul %63, %64, %cst_25 {dimension_numbers = #tpu.dot_dimension_numbers<[1], [1], [0], [0], [0, 0, 1, 0], [], []>} : vector<8x16xbf16>, vector<8x16xbf16>, vector<8x8xf32> -> vector<8x8xf32>
    %cst_26 = arith.constant -1.000000e+30 : f32
    %67 = vector.broadcast %cst_26 : f32 to vector<8x8xf32>
    %68 = arith.select %43, %66, %67 : vector<8x8xi1>, vector<8x8xf32>
    %cst_27 = arith.constant dense<0xFF800000> : vector<8xf32>
    %69 = vector.multi_reduction <maximumf>, %68, %cst_27 [1] : vector<8x8xf32> to vector<8xf32>
    %70 = vector.shape_cast %69 : vector<8xf32> to vector<8x1xf32>
    %71 = vector.broadcast %70 : vector<8x1xf32> to vector<8x8xf32>
    %72 = arith.subf %68, %71 : vector<8x8xf32>
    %73 = math.exp %72 : vector<8x8xf32>
    %cst_28 = arith.constant dense<0.000000e+00> : vector<8xf32>
    %74 = vector.multi_reduction <add>, %73, %cst_28 [1] : vector<8x8xf32> to vector<8xf32>
    %75 = vector.shape_cast %74 : vector<8xf32> to vector<8x1xf32>
    %76 = tpu.reciprocal %75 {approx = true} : vector<8x1xf32> -> vector<8x1xf32>
    %77 = vector.broadcast %76 : vector<8x1xf32> to vector<8x8xf32>
    %78 = arith.mulf %73, %77 : vector<8x8xf32>
    %79 = arith.truncf %78 : vector<8x8xf32> to vector<8x8xbf16>
    %cst_29 = arith.constant dense<0.000000e+00> : vector<8x16xf32>
    %80 = tpu.matmul %79, %65, %cst_29 {dimension_numbers = #tpu.dot_dimension_numbers<[1], [0], [0], [1], [0, 0, 1, 1], [], []>} : vector<8x8xbf16>, vector<8x16xbf16>, vector<8x16xf32> -> vector<8x16xf32>
    %81 = arith.truncf %80 : vector<8x16xf32> to vector<8x16xbf16>
    %82 = tpu.concatenate %62, %81 in 1 : vector<8x16xbf16>, vector<8x16xbf16> -> vector<8x32xbf16>
    %c0_30 = arith.constant 0 : index
    %c0_31 = arith.constant 0 : index
    %83 = vector.load %arg7[%c0_30, %c0_31] : memref<32x32xbf16, #tpu.memory_space<vmem>>, vector<32x32xbf16>
    %cst_32 = arith.constant dense<0.000000e+00> : vector<8x32xf32>
    %84 = tpu.matmul %82, %83, %cst_32 {dimension_numbers = #tpu.dot_dimension_numbers<[1], [0], [0], [1], [0, 0, 1, 1], [], []>} : vector<8x32xbf16>, vector<32x32xbf16>, vector<8x32xf32> -> vector<8x32xf32>
    %c0_33 = arith.constant 0 : index
    %c0_34 = arith.constant 0 : index
    %85 = vector.load %arg8[%c0_33, %c0_34] : memref<1x32xf32, #tpu.memory_space<vmem>>, vector<1x32xf32>
    %86 = vector.broadcast %85 : vector<1x32xf32> to vector<8x32xf32>
    %87 = arith.addf %84, %86 : vector<8x32xf32>
    %c0_35 = arith.constant 0 : index
    %c0_36 = arith.constant 0 : index
    %c0_37 = arith.constant 0 : index
    %88 = vector.load %arg9[%c0_35, %c0_36, %c0_37] : memref<1x8x32xf32, #tpu.memory_space<vmem>>, vector<1x8x32xf32>
    %89 = vector.shape_cast %88 : vector<1x8x32xf32> to vector<8x32xf32>
    %90 = vector.shape_cast %87 : vector<8x32xf32> to vector<1x8x32xf32>
    tpu.vector_store %arg9[%c0_35, %c0_36, %c0_37], %90 {strides = array<i32>} : memref<1x8x32xf32, #tpu.memory_space<vmem>>, vector<1x8x32xf32>,
    return
  }
  func.func @transform_0(%arg0: i32) -> (i32, i32, i32) {
    %c0_i32 = arith.constant 0 : i32
    %c0_i32_0 = arith.constant 0 : i32
    %c0_i32_1 = arith.constant 0 : i32
    return %arg0, %c0_i32, %c0_i32_0 : i32, i32, i32
  }
  func.func @transform_1(%arg0: i32) -> (i32, i32, i32) {
    %c0_i32 = arith.constant 0 : i32
    %c0_i32_0 = arith.constant 0 : i32
    %c0_i32_1 = arith.constant 0 : i32
    return %arg0, %c0_i32, %c0_i32_0 : i32, i32, i32
  }
  func.func @transform_2(%arg0: i32) -> (i32, i32, i32) {
    %c0_i32 = arith.constant 0 : i32
    %c0_i32_0 = arith.constant 0 : i32
    %c0_i32_1 = arith.constant 0 : i32
    return %arg0, %c0_i32, %c0_i32_0 : i32, i32, i32
  }
  func.func @transform_3(%arg0: i32) -> (i32, i32) {
    %c0_i32 = arith.constant 0 : i32
    %c0_i32_0 = arith.constant 0 : i32
    %c0_i32_1 = arith.constant 0 : i32
    return %c0_i32, %c0_i32_0 : i32, i32
  }
  func.func @transform_4(%arg0: i32) -> (i32, i32) {
    %c0_i32 = arith.constant 0 : i32
    %c0_i32_0 = arith.constant 0 : i32
    %c0_i32_1 = arith.constant 0 : i32
    return %c0_i32, %c0_i32_0 : i32, i32
  }
  func.func @transform_5(%arg0: i32) -> (i32, i32) {
    %c0_i32 = arith.constant 0 : i32
    %c0_i32_0 = arith.constant 0 : i32
    %c0_i32_1 = arith.constant 0 : i32
    return %c0_i32, %c0_i32_0 : i32, i32
  }
  func.func @transform_6(%arg0: i32) -> (i32, i32) {
    %c0_i32 = arith.constant 0 : i32
    %c0_i32_0 = arith.constant 0 : i32
    %c0_i32_1 = arith.constant 0 : i32
    return %c0_i32, %c0_i32_0 : i32, i32
  }
  func.func @transform_7(%arg0: i32) -> (i32, i32) {
    %c0_i32 = arith.constant 0 : i32
    %c0_i32_0 = arith.constant 0 : i32
    %c0_i32_1 = arith.constant 0 : i32
    return %c0_i32, %c0_i32_0 : i32, i32
  }
  func.func @transform_8(%arg0: i32) -> (i32, i32, i32) {
    %c0_i32 = arith.constant 0 : i32
    %c0_i32_0 = arith.constant 0 : i32
    %c0_i32_1 = arith.constant 0 : i32
    return %arg0, %c0_i32, %c0_i32_0 : i32, i32, i32
  }
}

</mosaic_0001>

<bundles_post_ra>
// kernel: tpu_custom_call.1
= control target key start
LH: loop header
LB: loop body
LE: loop exit
PB: predicated region body
PF: predicated region fallthrough
CT: control target
= control target key end

     0   :  { %13 = vsyncpa [#allocation3], 0  ;;  %s1602_s0 = inlined_call_operand.vmem [shape: f32[2,8,32], index: 0, kind: input, shape index: {}]   ;;  %s1603_s1 = inlined_call_operand.hbm [shape: f32[2,1,8], index: 1, kind: input, shape index: {}]   ;;  %s1604_s2 = inlined_call_operand.vmem [shape: f32[2,8,1], index: 2, kind: input, shape index: {}]   ;;  %s1605_s3 = inlined_call_operand.vmem [shape: f32[1,32], index: 3, kind: input, shape index: {}]   ;;  %s1606_s4 = inlined_call_operand.hbm [shape: f32[1,32], index: 4, kind: input, shape index: {}]   ;;  %s1607_s5 = inlined_call_operand.vmem [shape: bf16[32,96], index: 5, kind: input, shape index: {}]   ;;  %s1608_s6 = inlined_call_operand.hbm [shape: bf16[32,32], index: 6, kind: input, shape index: {}]   ;;  %s1609_s7 = inlined_call_operand.vmem [shape: f32[1,32], index: 7, kind: input, shape index: {}]   ;;  %s1610_s8 = inlined_call_operand.hbm [shape: f32[2,8,32], index: 8, kind: output, shape index: {}]  }
   0x1   :  { %15 = vsyncpa [#allocation3 + $0x1], 0 }
   0x2   :  { %16 = vsyncpa [#allocation6], 0 }
   0x3   :  { %17 = vsyncpa [#allocation4], 0 }
   0x4   :  { %19 = vsyncpa [#allocation4 + $0x1], 0  ;;  %s1306_s27 = smov 0   ;;  %s1308_s28 = smov 0  }
   0x5   :  { %s1310_s29 = smov 0   ;;  %s1312_s30 = smov 0  }
   0x6 LB: > { %s1327_s9 = sadd.s32 4294967295, %s1244_s30   ;;  %s910_s10 = sadd.s32 4294967294, %s1244_s30   ;;  %s1244_s30 = sphi %s1312_s30, %s1630_s30   ;;  %s1240_s29 = sphi %s1310_s29, %s1629_s29   ;;  %s1236_s28 = sphi %s1308_s28, %s1628_s28   ;;  %s1232_s27 = sphi %s1306_s27, %s1627_s27  }
   0x7   : > { %p71_p0 = scmp.ne.s32.totalorder %s1236_s28, %s1232_s27  ;;  %p1611_p1 = scmp.eq.s32.totalorder %s1327_s9, 0 }
   0x8   : > { %p232_p3 = scmp.eq.s32.totalorder %s910_s10, 1  ;;  %p911_p5 = scmp.ge.s32.totalorder %s1244_s30, 1 }
   0x9   : > { %p1336_p4 = por %p1611_p1, %p71_p0  ;;  %p239_p7 = scmp.lt.s32.totalorder %s1244_s30, 3 }
   0xa   : > { %p1341_p6 = por %p232_p3, %p71_p0  ;;  %s1246_s14 = smov [#allocation5]  }
   0xb   : > { %s1614_s11 = scalar_select %p1336_p4, 1, 0 }
   0xc   : > { %s1615_s12 = scalar_select %p1341_p6, 1, 0 }
   0xd   : > { %p1346_p8 = pnand %p911_p5, %p239_p7  ;;  %s255_s15 = sshll.u32 %s1246_s14, 4  ;;  %s256_s15 = int_to_ptr.vmem [resolvable:$true] %s255_s15 }
   0xe   : > { %s1247_s16 = smov [#allocation7]   ;;  %s1088_s21 = scalar_lea.hbm %s1606_s4, 16 }
   0xf   : > { %s1616_s13 = scalar_select %p1346_p8, 1, 0 }
  0x10   : > { %p1006_p10 = pneg %p1346_p8  ;;  %s268_s17 = sshll.u32 %s1247_s16, 4  ;;  %s1359_s17 = int_to_ptr.vmem [resolvable:$true] %s268_s17 }
  0x11   : > { %p1089_p12 = scmp.ne.s32.totalorder %s1606_s4, %s1088_s21  ;;  %p1095_p5 = scmp.lt.u32.totalorder %s1088_s21, %s1606_s4 }
  0x12   : > { %p1355_p11 = pnand %p1006_p10, %p1611_p1 }
  0x14   : > { %p1090_p13 = pneg %p1355_p11 }
  0x16   : > { %p1091_p0 = pnand %p1090_p13, %p1089_p12 }
  0x18   : > { %p1092_p3 = pneg %p1091_p0 }
  0x1a   : > { %p1097_p7 = pnand %p1095_p5, %p1092_p3 }
  0x1c   : > { %1100 = shalt.err (!%p1097_p7)
}
  0x1d   : > { %s1101_s26 = scalar_lea.vmem %s256_s15, 16  ;;  %s1108_s10 = scalar_lea.vmem %s256_s15, 32 }
  0x1e   : > { %p1102_p10 = scmp.ne.s32.totalorder %s256_s15, %s1101_s26  ;;  %p1109_p2 = scmp.lt.s32.totalorder %s256_s15, %s256_s15 }
  0x1f   : > { %p1110_p6 = scmp.lt.s32.totalorder %s1108_s10, %s1101_s26 }
  0x20   : > { %p1104_p9 = pnand %p1102_p10, %p1090_p13 }
  0x21   : > { %p1111_p4 = por %p1110_p6, %p1109_p2 }
  0x22   : > { %p1105_p1 = pneg %p1104_p9 }
  0x24   : > { %p1112_p8 = pnand %p1111_p4, %p1105_p1 }
  0x26   : > { %1115 = shalt.err (!%p1112_p8)
}
  0x27   : > { %1009 = dma.hbm_to_vmem [thread:$0]  (!%p1355_p11), %s1606_s4, 16, %s256_s15, [#allocation6]  }
  0x28   : > { %s1116_s21 = scalar_lea.hbm %s1608_s6, 256 }
  0x29   : > { %p1117_p9 = scmp.ne.s32.totalorder %s1608_s6, %s1116_s21  ;;  %p1123_p4 = scmp.lt.u32.totalorder %s1116_s21, %s1608_s6 }
  0x2b   : > { %p1119_p2 = pnand %p1117_p9, %p1090_p13 }
  0x2d   : > { %p1120_p1 = pneg %p1119_p2 }
  0x2f   : > { %p1125_p6 = pnand %p1123_p4, %p1120_p1 }
  0x31   : > { %1128 = shalt.err (!%p1125_p6)
}
  0x32   : > { %s1129_s15 = scalar_lea.vmem %s1359_s17, 256  ;;  %p1137_p3 = scmp.lt.s32.totalorder %s1359_s17, %s1359_s17 }
  0x33   : > { %p1130_p8 = scmp.ne.s32.totalorder %s1359_s17, %s1129_s15  ;;  %p1138_p5 = scmp.lt.s32.totalorder %s1129_s15, %s1129_s15 }
  0x35   : > { %p1132_p12 = pnand %p1130_p8, %p1090_p13  ;;  %p1139_p7 = por %p1138_p5, %p1137_p3 }
  0x37   : > { %p1133_p0 = pneg %p1132_p12 }
  0x39   : > { %p1140_p10 = pnand %p1139_p7, %p1133_p0 }
  0x3b   : > { %1143 = shalt.err (!%p1140_p10)
}
  0x3c   : > { %s1248_s26 = smov 64   ;;  %s1249_s10 = smov 4  }
  0x3d   : > { %1012 = dma.hbm_to_vmem [thread:$0]  (!%p1355_p11), %s1608_s6, 256, %s1359_s17, [#allocation6], %s1248_s26, %s1248_s26, %s1249_s10  }
  0x3e   : > { %s1409_s19 = sadd.s32 1, %s1244_s30   ;;  %s58_s20 = sadd.s32 1, %s1240_s29 }
  0x3f   : > { %s55_s21 = ssub.s32 %s1244_s30, %s1409_s19  ;;  %p65_p13 = scmp.ne.s32.totalorder %s1240_s29, %s1236_s28 }
  0x40   : > { %p56_p9 = scmp.eq.s32.totalorder %s55_s21, 0  ;;  %p66_p2 = scmp.eq.s32.totalorder %s1244_s30, 0 }
  0x41   : > { %p1618_p1 = scmp.eq.s32.totalorder %s1327_s9, 1  ;;  %p1023_p6 = scmp.lt.s32.totalorder %s1244_s30, 2 }
  0x42   : > { %s1425_s23 = scalar_select %p56_p9, %s1240_s29, %s58_s20  }
  0x43   : > { %p1419_p4 = por %p1618_p1, %p65_p13  ;;  %p67_p8 = por %p66_p2, %p65_p13 }
  0x44   : > { %s292_s18 = sand.u32 1, %s1240_s29   ;;  %s915_s24 = sshll.u32 %s1244_s30, 4 }
  0x45   : > { %s295_s17 = scalar_lea.vmem [#allocation2], %s292_s18  ;;  %s1432_s10 = scalar_lea.hbm %s1603_s1, %s915_s24 }
  0x46   : > { %s302_s25 = sshll.u32 %s295_s17, 4  ;;  %p1436_p11 = pnand %p1023_p6, %p67_p8  ;;  %s1434_s25 = int_to_ptr.vmem [resolvable:$true] %s302_s25 }
  0x47   : > { %s293_s16 = scalar_lea.sflag [#allocation3], %s292_s18  ;;  %s1144_s20 = scalar_lea.hbm %s1432_s10, 16 }
  0x48   : > { %p1145_p12 = scmp.ne.s32.totalorder %s1432_s10, %s1144_s20  ;;  %p1146_p0 = pneg %p1436_p11 }
  0x49   : > { %s1149_s17 = scalar_lea.hbm %s1603_s1, 32  ;;  %p1150_p7 = scmp.lt.u32.totalorder %s1432_s10, %s1603_s1 }
  0x4a   : > { %p1147_p3 = pnand %p1146_p0, %p1145_p12  ;;  %p1151_p10 = scmp.lt.u32.totalorder %s1149_s17, %s1144_s20 }
  0x4b   : > { %p1153_p9 = scmp.lt.u32.totalorder %s1144_s20, %s1432_s10 }
  0x4c   : > { %p1148_p5 = pneg %p1147_p3  ;;  %p1152_p13 = por %p1151_p10, %p1150_p7 }
  0x4e   : > { %p1154_p2 = por %p1153_p9, %p1152_p13 }
  0x50   : > { %p1155_p1 = pnand %p1154_p2, %p1148_p5 }
  0x52   : > { %1158 = shalt.err (!%p1155_p1)
}
  0x53   : > { %s1159_s18 = scalar_lea.vmem %s1434_s25, 16  ;;  %s1250_s21 = smov [#allocation2]  }
  0x54   : > { %p1160_p6 = scmp.ne.s32.totalorder %s1434_s25, %s1159_s18  ;;  %s1164_s24 = sshll.u32 %s1250_s21, 4  ;;  %s1165_s24 = int_to_ptr.vmem [resolvable:$false] %s1164_s24 }
  0x55   : > { %s1166_s15 = scalar_lea.vmem %s1165_s24, 32  ;;  %p1167_p3 = scmp.lt.s32.totalorder %s1434_s25, %s1165_s24 }
  0x56   : > { %p1162_p8 = pnand %p1160_p6, %p1146_p0  ;;  %p1168_p7 = scmp.lt.s32.totalorder %s1166_s15, %s1159_s18 }
  0x58   : > { %p1163_p12 = pneg %p1162_p8  ;;  %p1169_p10 = por %p1168_p7, %p1167_p3 }
  0x5a   : > { %p1170_p13 = pnand %p1169_p10, %p1163_p12 }
  0x5c   : > { %1173 = shalt.err (!%p1170_p13)
}
  0x5d   : > { %1016 = dma.hbm_to_vmem [thread:$0]  (!%p1436_p11), %s1432_s10, 16, %s1434_s25, %s293_s16  }
  0x5e   : > { %p1621_p5 = scmp.ne.s32.totalorder %s1616_s13, 0 }
  0x5f   : > { %s1468_s20 = sand.u32 (!%p1621_p5), 1, %s1236_s28   ;;  %p1622_p0 = scmp.ne.s32.totalorder (!%p1621_p5), %s1614_s11, 0 }
  0x60   : > { %318 = sbr.rel (%p1621_p5) target bundleno = 1862 (0x746), region = 52  ;;  %s321_s17 = scalar_lea.sflag (!%p1621_p5), [#allocation3], %s1468_s20 }
  0x61   : > { %s323_s26 = scalar_lea.vmem (!%p1621_p5), [#allocation2], %s1468_s20 }
  0x67   : > { %1219 = dma.done.wait (%p1622_p0), %s321_s17, 16  }
  0x68   : > { %1221 = vsyncadd (%p1622_p0), %s321_s17, 4294967280  ;;  %p1623_p9 = scmp.eq.s32.totalorder %s1327_s9, 0 }
  0x6a   : > { %1223 = dma.done.wait (%p1623_p9), [#allocation6], 272   ;;  %p1624_p11 = pmov %p1623_p9 }
  0x6b   : > { %p371_p2 = scmp.lt.s32.totalorder %s1327_s9, 1  ;;  %vm381_vm0 = vcmask 261120   ;;  %v1074_v7 = vld [vmem:[%s1607_s5] sm:$0xff]   ;;  %v1251_v8 = vmov 0.0   ;;  %vm1252_vm1 = vmmov 0   ;;  %v1075_v9 = vld [vmem:[%s1607_s5 + $0x8] sm:$0xff]  }
  0x6c   : > { %1225 = vsyncadd (%p1624_p11), [#allocation6], 4294967024  ;;  %954 = vmatprep.subr.bf16.mxu0 %v1251_v8  ;;  %958 = vmatprep.mubr.msk.bf16.mxu0 %vm1252_vm1, %v1251_v8  ;;  %v922_v14 = vld [vmem:[%s1605_s3] ss:$0 sm:$0xff]  ;;  %v923_v16 = vld [vmem:[#allocation5] ss:$0 sm:$0xff] }
  0x6d   : > { %s1482_s13 = scalar_select %p371_p2, %s1327_s9, 1  ;;  %955 = vmatpush3.bf16.msra.mxu0 %v1074_v7  ;;  %962 = vmatprep.subr.bf16.mxu1 %v1251_v8  ;;  %v1256_v25 = vmov 0   ;;  %vm491_vm2 = vcmask 130048   ;;  %v927_v32 = vld [vmem:[%s323_s26] ss:$0 sm:$0xff]  ;;  %vm539_vm4 = vcmask 64512  }
  0x6e   : > { %956 = vmatprep.subr.bf16.mxu0 %v1251_v8  ;;  %964 = vmatprep.mubr.msk.bf16.mxu1 %vm1252_vm1, %v1251_v8  ;;  %s1253_s10 = smov 112   ;;  %s1254_s14 = smov 96   ;;  %vm557_vm5 = vcmask 1043456  }
  0x6f   : > { %s920_s25 = sshll.u32 %s1482_s13, 3  ;;  %s1255_s21 = smov 80   ;;  %1073 = vset.pattern.permute.xlu0 %v1256_v25  ;;  %1072 = vset.pattern.permute.xlu1 %v1256_v25 }
  0x70   : > { %s374_s11 = scalar_lea.vmem %s1602_s0, %s920_s25  ;;  %s378_s18 = scalar_lea.vmem %s1604_s2, %s920_s25 }
  0x71   : > { %v380_v0 = vld [vmem:[%s374_s11] sm:$0xff]  ;;  %957 = vmatpush3.bf16.msra.mxu0 %v1075_v9  ;;  %s1257_s26 = smov 48   ;;  %s1258_s13 = smov 64  }
  0x72   : > { %v382_v1 = vsel %vm381_vm0, %v380_v0, 0.0  ;;  %968 = vmatprep.subr.bf16.mxu0 %v1251_v8  ;;  %v473_v26 = vld [vmem:[%s378_s18] sm:$0xff]  ;;  %s1259_s25 = smov 16   ;;  %s919_s24 = sshll.u32 %s1468_s20, 3 }
  0x73   : > { %383 = vadd.xlane.f32.xlu0 %v382_v1 }
 0x100   : > { %v384_v2 = vpop.xlane.xlu0 %383 }
 0x101   : > { %v386_v3 = vmul.f32 0.03125, %v384_v2 }
 0x103   : > { %v387_v4 = vsub.f32 %v380_v0, %v386_v3 }
 0x105   : > { %v388_v5 = vmul.f32 %v387_v4, %v387_v4 }
 0x107   : > { %v389_v6 = vsel %vm381_vm0, %v388_v5, 0.0  ;;  %v1076_v5 = vld [vmem:[#allocation7] sm:$0xff]  }
 0x108   : > { %390 = vadd.xlane.f32.xlu0 %v389_v6  ;;  %v1077_v6 = vld [vmem:[#allocation7 + $0x8] sm:$0xff]  }
 0x195   : > { %v391_v10 = vpop.xlane.xlu0 %390 }
 0x196   : > { %v392_v11 = vmul.f32 0.03125, %v391_v10 }
 0x198   : > { %v393_v12 = vadd.f32 1e-05, %v392_v11 }
 0x19a   : > { %1078 = vrsqrt.f32 %v393_v12 }
 0x1a4   : > { %v1079_v13 = vpop.eup %1078 }
 0x1a5   : > { %v395_v15 = vmul.f32 %v1079_v13, %v387_v4 }
 0x1a7   : > { %v403_v17 = vmul.f32 %v922_v14, %v395_v15 }
 0x1a9   : > { %v411_v18 = vadd.f32 %v923_v16, %v403_v17 }
 0x1ab   : > { %v412_v19 = vpack.c.bf16 %v411_v18, %v411_v18 }
 0x1ad   : > { %959 = vmatmul.mubr.msk.bf16.vlgmr.msra.gmra.mrb[0].mxu0 %vm381_vm0, %v412_v19 }
 0x1ae   : > { %970 = vmatprep.mubr.msk.bf16.mxu0 %vm1252_vm1, %v1251_v8 }
 0x280   : > { %v466_v20 = vpop.f32.mrb[0].mxu0 }
 0x281   : > { %v1512_v21 = vpack.c.bf16 %v466_v20, %v466_v20  ;;  %v960_v22 = vpop.f32.mrb[1].mxu0 }
 0x282   : > { %v469_v23 = vpop.f32.mrb[2].mxu0 }
 0x283   : > { %602 = vrot.lane.b32.xlu0 %v1512_v21, %s1253_s10  ;;  %489 = vrot.lane.b32.xlu1 %v1512_v21, %s1254_s14  ;;  %v961_v24 = vpop.f32.mrb[3].mxu0  ;;  %s937_s10 = sshll.u32 %s1327_s9, 7  ;;  %s370_s14 = scalar_lea.vmem [#allocation8], %s919_s24 }
 0x284   : > { %s800_s11 = sshll.u32 %s370_s14, 4  ;;  %s787_s9 = scalar_lea.sflag [#allocation4], %s1468_s20  ;;  %s1559_s11 = int_to_ptr.vmem [resolvable:$true] %s800_s11 }
 0x287   : > { %604 = vrot.lane.b32.xlu1 %v1512_v21, %s1255_s21  ;;  %s1557_s21 = scalar_lea.hbm %s1610_s8, %s937_s10 }
 0x28b   : > { %477 = vperm.xlu1 %1072, %v473_v26  }
 0x2f5   : > { %v490_v27 = vpop.permute.xlu1 %489  ;;  %v603_v31 = vpop.permute.xlu0 %602 }
 0x2f6   : > { %v496_v28 = vsel %vm491_vm2, %v490_v27, 0 }
 0x2f7   : > { %963 = vmatpush3.bf16.xpose.msra.mxu1 %v496_v28 }
 0x2f8   : > { %974 = vmatprep.subr.bf16.mxu1 %v1251_v8 }
 0x2f9   : > { %v605_v29 = vpop.permute.xlu1 %604 }
 0x2fa   : > { %v610_v30 = vsel %vm491_vm2, %v605_v29, 0 }
 0x2fe   : > { %965 = vmatmul.mubr.msk.bf16.vlgmr.msra.gmra.mrb[0].mxu1 %vm491_vm2, %v1512_v21 }
 0x2ff   : > { %975 = vmatpush3.bf16.xpose.msra.mxu1 %v610_v30  ;;  %976 = vmatprep.mubr.msk.bf16.mxu1 %vm1252_vm1, %v1251_v8 }
 0x300   : > { %986 = vmatprep.subr.bf16.mxu1 %v1251_v8 }
 0x306   : > { %977 = vmatmul.mubr.msk.bf16.vlgmr.msra.gmra.mrb[4].mxu1 %vm491_vm2, %v603_v31 }
 0x307   : > { %990 = vmatprep.mubr.msk.bf16.mxu1 %vm1252_vm1, %v1251_v8  ;;  %987 = vmatpush3.bf16.msra.mxu1 %v1076_v5 }
 0x308   : > { %988 = vmatprep.subr.bf16.mxu1 %v1251_v8 }
 0x30a   : > { %v478_v33 = vpop.permute.xlu1 %477 }
 0x30b   : > { %v486_v34 = vmul.f32 %v927_v32, %v478_v33  ;;  %989 = vmatpush3.bf16.msra.mxu1 %v1077_v6 }
 0x30d   : > { %vm487_vm3 = vcmp.gt.f32.partialorder %v486_v34, 0.5 }
 0x3d1   : > { %v532_v35 = vpop.f32.mrb[0].mxu1 }
 0x3d2   : > { %v538_v36 = vsel %vm487_vm3, %v532_v35, -1e+30  ;;  %v966_v37 = vpop.f32.mrb[1].mxu1 }
 0x3d3   : > { %v535_v38 = vpop.f32.mrb[2].mxu1  ;;  %v540_v39 = vsel %vm539_vm4, %v538_v36, -inf }
 0x3d4   : > { %v967_v40 = vpop.f32.mrb[3].mxu1  ;;  %541 = vmax.xlane.f32.xlu1 %v540_v39 }
 0x3d9   : > { %v646_v41 = vpop.f32.mrb[4].mxu1 }
 0x3da   : > { %v652_v42 = vsel %vm487_vm3, %v646_v41, -1e+30  ;;  %v978_v43 = vpop.f32.mrb[5].mxu1 }
 0x3db   : > { %v649_v44 = vpop.f32.mrb[6].mxu1  ;;  %v653_v45 = vsel %vm539_vm4, %v652_v42, -inf }
 0x3dc   : > { %v979_v46 = vpop.f32.mrb[7].mxu1  ;;  %654 = vmax.xlane.f32.xlu0 %v653_v45 }
 0x3f2   : > { %665 = vrot.lane.b32.xlu0 %v1512_v21, %s1257_s26  ;;  %s1174_s26 = scalar_lea.vmem %s1559_s11, 128 }
 0x3f3   : > { %p1175_p1 = scmp.ne.s32.totalorder %s1559_s11, %s1174_s26 }
 0x3f5   : > { %p1176_p6 = pnand %p1175_p1, %p1419_p4 }
 0x3f7   : > { %p1177_p8 = pneg %p1176_p6 }
 0x461   : > { %v542_v47 = vpop.xlane.xlu1 %541 }
 0x462   : > { %v543_v48 = vsub.f32 %v538_v36, %v542_v47 }
 0x464   : > { %v544_v49 = vmul.f32 1.442695, %v543_v48 }
 0x466   : > { %1080 = vpow2.f32 %v544_v49 }
 0x469   : > { %v655_v50 = vpop.xlane.xlu0 %654 }
 0x46a   : > { %v656_v51 = vsub.f32 %v652_v42, %v655_v50 }
 0x46c   : > { %v657_v52 = vmul.f32 1.442695, %v656_v51 }
 0x46d   : > { %v666_v63 = vpop.permute.xlu0 %665 }
 0x46e   : > { %1082 = vpow2.f32 %v657_v52  ;;  %v671_v1 = vsel %vm557_vm5, %v666_v63, 0 }
 0x470   : > { %v1081_v53 = vpop.eup %1080 }
 0x471   : > { %v546_v54 = vsel %vm539_vm4, %v1081_v53, 0.0 }
 0x472   : > { %547 = vadd.xlane.f32.xlu1 %v546_v54 }
 0x478   : > { %v1083_v55 = vpop.eup %1082 }
 0x479   : > { %v659_v56 = vsel %vm539_vm4, %v1083_v55, 0.0 }
 0x47a   : > { %660 = vadd.xlane.f32.xlu1 %v659_v56 }
 0x48b   : > { %552 = vrot.lane.b32.xlu1 %v1512_v21, %s1258_s13  ;;  %s1260_s13 = smov [#allocation8]  }
 0x4ff   : > { %v548_v57 = vpop.xlane.xlu1 %547 }
 0x500   : > { %1084 = vrcp.f32 %v548_v57 }
 0x507   : > { %v661_v58 = vpop.xlane.xlu1 %660 }
 0x508   : > { %1086 = vrcp.f32 %v661_v58 }
 0x50a   : > { %v1085_v59 = vpop.eup %1084 }
 0x50b   : > { %v550_v60 = vmul.f32 %v1085_v59, %v1081_v53  ;;  %v553_v61 = vpop.permute.xlu1 %552 }
 0x50c   : > { %v559_v62 = vsel %vm557_vm5, %v553_v61, 0 }
 0x50d   : > { %969 = vmatpush3.bf16.msra.mxu0 %v559_v62  ;;  %v551_v0 = vpack.c.bf16 %v550_v60, %v550_v60 }
 0x50e   : > { %980 = vmatprep.subr.bf16.mxu0 %v1251_v8 }
 0x510   : > { %971 = vmatmul.mubr.msk.bf16.vlgmr.msra.gmra.mrb[4].mxu0 %vm539_vm4, %v551_v0 }
 0x511   : > { %981 = vmatpush3.bf16.msra.mxu0 %v671_v1  ;;  %982 = vmatprep.mubr.msk.bf16.mxu0 %vm1252_vm1, %v1251_v8  ;;  %v932_v8 = vld [vmem:[%s1609_s7] ss:$0 sm:$0xff] }
 0x512   : > { %v1087_v2 = vpop.eup %1086 }
 0x513   : > { %v663_v3 = vmul.f32 %v1087_v2, %v1083_v55 }
 0x515   : > { %v664_v4 = vpack.c.bf16 %v663_v3, %v663_v3 }
 0x518   : > { %983 = vmatmul.mubr.msk.bf16.vlgmr.msra.gmra.mrb[8].mxu0 %vm539_vm4, %v664_v4 }
 0x5e3   : > { %v595_v7 = vpop.f32.mrb[4].mxu0 }
 0x5e4   : > { %v972_v9 = vpop.f32.mrb[5].mxu0  ;;  %v601_v17 = vpack.c.bf16 %v595_v7, %v595_v7 }
 0x5e5   : > { %v598_v10 = vpop.f32.mrb[6].mxu0 }
 0x5e6   : > { %v973_v11 = vpop.f32.mrb[7].mxu0 }
 0x5eb   : > { %v707_v12 = vpop.f32.mrb[8].mxu0 }
 0x5ec   : > { %v713_v13 = vpack.c.bf16 %v707_v12, %v707_v12  ;;  %v984_v14 = vpop.f32.mrb[9].mxu0 }
 0x5ed   : > { %v710_v15 = vpop.f32.mrb[10].mxu0 }
 0x5ee   : > { %715 = vrot.lane.b32.xlu1 %v713_v13, %s1259_s25  ;;  %v985_v16 = vpop.f32.mrb[11].mxu0  ;;  %s1178_s25 = sshll.u32 %s1260_s13, 4  ;;  %s1179_s25 = int_to_ptr.vmem [resolvable:$false] %s1178_s25 }
 0x5ef   : > { %s1180_s24 = scalar_lea.vmem %s1179_s25, 256  ;;  %p1181_p12 = scmp.lt.s32.totalorder %s1559_s11, %s1179_s25 }
 0x5f0   : > { %p1182_p3 = scmp.lt.s32.totalorder %s1180_s24, %s1174_s26 }
 0x5f2   : > { %p1183_p7 = por %p1182_p3, %p1181_p12 }
 0x5f4   : > { %p1184_p10 = pnand %p1183_p7, %p1177_p8 }
 0x660   : > { %v716_v18 = vpop.permute.xlu1 %715 }
 0x661   : > { %v719_v19 = vsel %vm491_vm2, %v601_v17, %v716_v18 }
 0x662   : > { %991 = vmatmul.mubr.msk.bf16.vlgmr.msra.gmra.mrb[8].mxu1 %vm381_vm0, %v719_v19 }
 0x735   : > { %v779_v20 = vpop.f32.mrb[8].mxu1 }
 0x736   : > { %v780_v21 = vadd.f32 %v932_v8, %v779_v20  ;;  %v992_v22 = vpop.f32.mrb[9].mxu1 }
 0x737   : > { %v782_v23 = vpop.f32.mrb[10].mxu1 }
 0x738   : > { %v993_v24 = vpop.f32.mrb[11].mxu1  ;;  %785 = vst.msk [vmem:[%s370_s14] sm:$0xff] %vm381_vm0, %v780_v21 }
 0x739   : > { %1187 = shalt.err (!%p1184_p10)
}
 0x73a   : > { %s1188_s20 = scalar_lea.hbm %s1557_s21, 128  ;;  %s1192_s10 = scalar_lea.hbm %s1610_s8, 256 }
 0x73b   : > { %p1189_p13 = scmp.ne.s32.totalorder %s1557_s21, %s1188_s20  ;;  %p1193_p9 = scmp.lt.u32.totalorder %s1557_s21, %s1610_s8 }
 0x73c   : > { %p1194_p11 = scmp.lt.u32.totalorder %s1192_s10, %s1188_s20  ;;  %p1196_p1 = scmp.lt.u32.totalorder %s1188_s20, %s1557_s21 }
 0x73d   : > { %p1190_p5 = pnand %p1189_p13, %p1419_p4 }
 0x73e   : > { %p1195_p2 = por %p1194_p11, %p1193_p9 }
 0x73f   : > { %p1191_p0 = pneg %p1190_p5 }
 0x740   : > { %p1197_p6 = por %p1196_p1, %p1195_p2 }
 0x742   : > { %p1198_p8 = pnand %p1197_p6, %p1191_p0 }
 0x744   : > { %1201 = shalt.err (!%p1198_p8)
}
 0x745   : > { %1004 = dma.vmem_to_hbm [thread:$0]  (%p1419_p4), %s1559_s11, 128, %s1557_s21, %s787_s9  }
 0x746 PF: > { %s812_s18 = sand.u32 1, %s1232_s27   ;;  %p1625_p12 = scmp.ne.s32.totalorder %s1615_s12, 0 }
 0x747   : > { %p1626_p3 = scmp.ge.s32.totalorder %s1244_s30, 2  ;;  %s813_s26 = scalar_lea.sflag [#allocation4], %s812_s18 }
 0x749   : > { %p1018_p7 = pnand %p1626_p3, %p1625_p12 }
 0x74b   : > { %1227 = dma.done.wait (!%p1018_p7), %s813_s26, 128  }
 0x74c   : > { %1229 = vsyncadd (!%p1018_p7), %s813_s26, 4294967168  ;;  %p22_p10 = scmp.ge.s32.totalorder %s1409_s19, 4   ;;  %s1627_s27 = smov %s1236_s28 }
 0x74d   : > { %s1628_s28 = smov %s1240_s29  ;;  %s1629_s29 = smov %s1425_s23 }
 0x74e   : > { %s1630_s30 = smov %s1409_s19  ;;  %24 = sbr.rel (!%p22_p10) target bundleno = 6 (0x6), region = 111 }
 0x755   :  { %818 = vsyncpa [#allocation3], 1 }
 0x756   :  { %820 = vsyncpa [#allocation3 + $0x1], 1 }
 0x757   :  { %821 = vsyncpa [#allocation6], 1 }
 0x758   :  { %822 = vsyncpa [#allocation4], 1 }
 0x759   :  { %824 = vsyncpa [#allocation4 + $0x1], 1 }

</bundles_post_ra>
